<compile_context>
chip_gen: v5e
topology: v5e:2x2
jax: 0.10.0
libtpu: 0.0.40
codegen_flags: <defaults>
</compile_context>

<pallas_src>
import functools

import jax
import jax.numpy as jnp
from jax.experimental import pallas as pl
from jax.experimental.pallas import tpu as pltpu


def _layer_norm(x, gamma, beta, eps):
    mu = jnp.mean(x, axis=-1, keepdims=True)
    xc = x - mu
    var = jnp.mean(xc * xc, axis=-1, keepdims=True)
    inv = jax.lax.rsqrt(var + eps)
    return xc * inv * gamma + beta


def _gelu(x):
    # TODO(synk): PyTorch nn.GELU() default is the exact erf formulation; the
    # tanh approximation is used here (tanh lowers cleanly on every TPU gen).
    c = 0.7978845608028654  # sqrt(2/pi)
    return 0.5 * x * (1.0 + jnp.tanh(c * (x + 0.044715 * x * x * x)))


def _encoder_kernel(x_ref,
                    wqkv_ref, bqkv_ref,
                    wo_ref, bo_ref,
                    r1_ref, g1_ref, be1_ref,
                    w1_ref, c1_ref, w2_ref, c2_ref,
                    r2_ref, g2_ref, be2_ref,
                    o_ref, h_ref, *, nhead, eps):
    l = pl.program_id(1)

    # First layer step of this batch element: load the input into the resident
    # hidden-state scratch.
    @pl.when(l == 0)
    def _():
        h_ref[...] = x_ref[...]

    x = h_ref[...]                       # (S, D) f32 -- previous layer output
    S, D = x.shape
    dh = D // nhead
    scale = 1.0 / (dh ** 0.5)

    # ---- multi-head self-attention (dropout = identity at inference) ----
    # Fused in-projection: one (S,D)x(D,3D) matmul on the MXU.
    qkv = (jnp.dot(x, wqkv_ref[...], preferred_element_type=jnp.float32)
           + bqkv_ref[...])
    q = qkv[:, 0 * D:1 * D]
    k = qkv[:, 1 * D:2 * D]
    v = qkv[:, 2 * D:3 * D]
    wo = wo_ref[...]

    attn = jnp.zeros((S, D), dtype=jnp.float32)
    for h in range(nhead):               # static, unrolled head loop
        lo, hi = h * dh, (h + 1) * dh
        qh = q[:, lo:hi] * scale
        kh = k[:, lo:hi]
        vh = v[:, lo:hi]
        # scores = qh @ kh^T (contract over head dim; native MXU, no transpose)
        s = jax.lax.dot_general(qh, kh, (((1,), (1,)), ((), ())),
                                preferred_element_type=jnp.float32)
        # TODO(synk): attn_mask is not supported (the module is used with mask=None).
        s = s - jnp.max(s, axis=-1, keepdims=True)
        p = jnp.exp(s)
        p = p * pl.reciprocal(jnp.sum(p, axis=-1, keepdims=True), approx=False)
        oh = jnp.dot(p, vh, preferred_element_type=jnp.float32)        # (S, dh)
        # Fold this head straight into the output projection (avoids a concat).
        attn = attn + jnp.dot(oh, wo[lo:hi, :],
                              preferred_element_type=jnp.float32)
    attn = attn + bo_ref[...]

    # residual 1 (+ optional res_param scale) + LayerNorm
    y = _layer_norm(x + r1_ref[...] * attn, g1_ref[...], be1_ref[...], eps)

    # ---- feed-forward ----
    hdn = jnp.dot(y, w1_ref[...], preferred_element_type=jnp.float32) + c1_ref[...]
    hdn = _gelu(hdn)
    ff = jnp.dot(hdn, w2_ref[...], preferred_element_type=jnp.float32) + c2_ref[...]

    z = _layer_norm(y + r2_ref[...] * ff, g2_ref[...], be2_ref[...], eps)

    h_ref[...] = z

    @pl.when(l == pl.num_programs(1) - 1)
    def _():
        o_ref[...] = z


def transformer_encoder_forward(x, params, *, nhead, eps=1e-5):
    """x: (B, S, D) f32.  params: dict of per-layer-stacked weights; all linear
    weights stored pre-transposed as (in_features, out_features)."""
    B, S, D = x.shape
    L, _, F = params["w1"].shape

    def xmap(b, l):
        return (b, 0, 0)

    def lmap(b, l):
        return (l, 0, 0)

    def wspec(r, c):
        return pl.BlockSpec((None, r, c), lmap)

    in_specs = [
        pl.BlockSpec((None, S, D), xmap),            # x
        wspec(D, 3 * D), wspec(1, 3 * D),            # Wqkv, bqkv (fused in-proj)
        wspec(D, D), wspec(1, D),                    # Wo, bo
        wspec(1, 1), wspec(1, D), wspec(1, D),       # res1, ln1 gamma, ln1 beta
        wspec(D, F), wspec(1, F),                    # W1, b1
        wspec(F, D), wspec(1, D),                    # W2, b2
        wspec(1, 1), wspec(1, D), wspec(1, D),       # res2, ln2 gamma, ln2 beta
    ]

    kernel = functools.partial(_encoder_kernel, nhead=nhead, eps=eps)
    out = pl.pallas_call(
        kernel,
        out_shape=jax.ShapeDtypeStruct((B, S, D), jnp.float32),
        grid_spec=pltpu.PrefetchScalarGridSpec(
            num_scalar_prefetch=0,
            grid=(B, L),
            in_specs=in_specs,
            out_specs=pl.BlockSpec((None, S, D), xmap),
            scratch_shapes=[pltpu.VMEM((S, D), jnp.float32)],
        ),
        compiler_params=pltpu.CompilerParams(
            dimension_semantics=("parallel", "arbitrary")),
    )(
        x,
        params["wqkv"], params["bqkv"],
        params["wo"], params["bo"],
        params["r1"], params["g1"], params["be1"],
        params["w1"], params["c1"], params["w2"], params["c2"],
        params["r2"], params["g2"], params["be2"],
    )
    return out


def _reference_forward(x, p, *, nhead, eps=1e-5):
    """Pure-JAX reference with identical math (smoke check)."""
    B, S, D = x.shape
    L = p["wqkv"].shape[0]
    dh = D // nhead
    scale = 1.0 / (dh ** 0.5)

    def ln(v, g, b):
        mu = v.mean(-1, keepdims=True)
        var = ((v - mu) ** 2).mean(-1, keepdims=True)
        return (v - mu) / jnp.sqrt(var + eps) * g + b

    h = x
    for l in range(L):
        qkv = h @ p["wqkv"][l] + p["bqkv"][l]
        q, k, v = qkv[..., :D], qkv[..., D:2 * D], qkv[..., 2 * D:]
        qh = q.reshape(B, S, nhead, dh).transpose(0, 2, 1, 3) * scale
        kh = k.reshape(B, S, nhead, dh).transpose(0, 2, 1, 3)
        vh = v.reshape(B, S, nhead, dh).transpose(0, 2, 1, 3)
        s = jnp.einsum("bhqd,bhkd->bhqk", qh, kh)
        pw = jax.nn.softmax(s, axis=-1)
        o = jnp.einsum("bhqk,bhkd->bhqd", pw, vh)
        o = o.transpose(0, 2, 1, 3).reshape(B, S, D)
        attn = o @ p["wo"][l] + p["bo"][l]
        h = ln(h + p["r1"][l] * attn, p["g1"][l], p["be1"][l])
        ff = _gelu(h @ p["w1"][l] + p["c1"][l]) @ p["w2"][l] + p["c2"][l]
        h = ln(h + p["r2"][l] * ff, p["g2"][l], p["be2"][l])
    return h


if __name__ == "__main__":
    # Small shapes consistent with the module:
    # batch=2, seq_len=8, d_model=32, nhead=4, dim_feedforward=64, num_layers=2
    B, S, D, H, F, L = 2, 8, 32, 4, 64, 2
    enable_res_param = False   # dropout is identity at inference

    key = jax.random.PRNGKey(0)
    ks = jax.random.split(key, 9)
    bound = 1.0 / (D ** 0.5)
    boundf = 1.0 / (F ** 0.5)

    def u(k, shape, b):
        return jax.random.uniform(k, shape, minval=-b, maxval=b, dtype=jnp.float32)

    res_init = 1e-8 if enable_res_param else 1.0
    params = dict(
        wqkv=u(ks[0], (L, D, 3 * D), bound), bqkv=u(ks[1], (L, 1, 3 * D), bound),
        wo=u(ks[2], (L, D, D), bound), bo=u(ks[3], (L, 1, D), bound),
        w1=u(ks[4], (L, D, F), bound), c1=u(ks[5], (L, 1, F), bound),
        w2=u(ks[6], (L, F, D), boundf), c2=u(ks[7], (L, 1, D), boundf),
        g1=jnp.ones((L, 1, D), jnp.float32), be1=jnp.zeros((L, 1, D), jnp.float32),
        g2=jnp.ones((L, 1, D), jnp.float32), be2=jnp.zeros((L, 1, D), jnp.float32),
        r1=jnp.full((L, 1, 1), res_init, jnp.float32),
        r2=jnp.full((L, 1, 1), res_init, jnp.float32),
    )

    x = jax.random.normal(ks[8], (B, S, D), dtype=jnp.float32)

    out = transformer_encoder_forward(x, params, nhead=H)
    out = jax.block_until_ready(out)

    ref = _reference_forward(x, params, nhead=H)
    assert out.shape == (B, S, D) and out.dtype == jnp.float32
    assert bool(jnp.all(jnp.isfinite(out)))
    err = float(jnp.max(jnp.abs(out - ref)))
    assert err < 1e-2, f"mismatch vs pure-JAX reference: {err}"
    print("KERNEL_OK")
</pallas_src>

<mosaic_0001>
module attributes {stable_mosaic.version = 11 : i64} {
  func.func @_encoder_kernel(%arg0: i32, %arg1: i32, %arg2: memref<1x8x32xf32, #tpu.memory_space<vmem>>, %arg3: memref<1x32x96xf32, #tpu.memory_space<vmem>>, %arg4: memref<1x1x96xf32, #tpu.memory_space<vmem>>, %arg5: memref<1x32x32xf32, #tpu.memory_space<vmem>>, %arg6: memref<1x1x32xf32, #tpu.memory_space<vmem>>, %arg7: memref<1x1x1xf32, #tpu.memory_space<vmem>>, %arg8: memref<1x1x32xf32, #tpu.memory_space<vmem>>, %arg9: memref<1x1x32xf32, #tpu.memory_space<vmem>>, %arg10: memref<1x32x64xf32, #tpu.memory_space<vmem>>, %arg11: memref<1x1x64xf32, #tpu.memory_space<vmem>>, %arg12: memref<1x64x32xf32, #tpu.memory_space<vmem>>, %arg13: memref<1x1x32xf32, #tpu.memory_space<vmem>>, %arg14: memref<1x1x1xf32, #tpu.memory_space<vmem>>, %arg15: memref<1x1x32xf32, #tpu.memory_space<vmem>>, %arg16: memref<1x1x32xf32, #tpu.memory_space<vmem>>, %arg17: memref<1x8x32xf32, #tpu.memory_space<vmem>>, %arg18: memref<8x32xf32, #tpu.memory_space<vmem>>) attributes {dimension_semantics = [#tpu.dimension_semantics<parallel>, #tpu.dimension_semantics<arbitrary>], iteration_bounds = array<i64: 2, 2>, scalar_prefetch = 0 : i64, scratch_operands = 1 : i64, tpu.core_type = #tpu.core_type<tc>, window_params = [{transform_indices = @transform_0, window_bounds = array<i64: 1, 8, 32>}, {transform_indices = @transform_1, window_bounds = array<i64: 1, 32, 96>}, {transform_indices = @transform_2, window_bounds = array<i64: 1, 1, 96>}, {transform_indices = @transform_3, window_bounds = array<i64: 1, 32, 32>}, {transform_indices = @transform_4, window_bounds = array<i64: 1, 1, 32>}, {transform_indices = @transform_5, window_bounds = array<i64: 1, 1, 1>}, {transform_indices = @transform_6, window_bounds = array<i64: 1, 1, 32>}, {transform_indices = @transform_7, window_bounds = array<i64: 1, 1, 32>}, {transform_indices = @transform_8, window_bounds = array<i64: 1, 32, 64>}, {transform_indices = @transform_9, window_bounds = array<i64: 1, 1, 64>}, {transform_indices = @transform_10, window_bounds = array<i64: 1, 64, 32>}, {transform_indices = @transform_11, window_bounds = array<i64: 1, 1, 32>}, {transform_indices = @transform_12, window_bounds = array<i64: 1, 1, 1>}, {transform_indices = @transform_13, window_bounds = array<i64: 1, 1, 32>}, {transform_indices = @transform_14, window_bounds = array<i64: 1, 1, 32>}, {transform_indices = @transform_15, window_bounds = array<i64: 1, 8, 32>}]} {
    %c0_i32 = arith.constant 0 : i32
    %0 = arith.cmpi eq, %arg1, %c0_i32 : i32
    %1 = arith.extui %0 : i1 to i32
    %c0_i32_0 = arith.constant 0 : i32
    %2 = arith.cmpi ne, %1, %c0_i32_0 : i32
    scf.if %2 {
      %c0_88 = arith.constant 0 : index
      %c0_89 = arith.constant 0 : index
      %c0_90 = arith.constant 0 : index
      %190 = vector.load %arg2[%c0_88, %c0_89, %c0_90] : memref<1x8x32xf32, #tpu.memory_space<vmem>>, vector<1x8x32xf32>
      %191 = vector.shape_cast %190 : vector<1x8x32xf32> to vector<8x32xf32>
      %c0_91 = arith.constant 0 : index
      %c0_92 = arith.constant 0 : index
      %192 = vector.load %arg18[%c0_91, %c0_92] : memref<8x32xf32, #tpu.memory_space<vmem>>, vector<8x32xf32>
      tpu.vector_store %arg18[%c0_91, %c0_92], %191 {strides = array<i32>} : memref<8x32xf32, #tpu.memory_space<vmem>>, vector<8x32xf32>,
    } else {
    }
    %c0 = arith.constant 0 : index
    %c0_1 = arith.constant 0 : index
    %3 = vector.load %arg18[%c0, %c0_1] : memref<8x32xf32, #tpu.memory_space<vmem>>, vector<8x32xf32>
    %c0_2 = arith.constant 0 : index
    %c0_3 = arith.constant 0 : index
    %c0_4 = arith.constant 0 : index
    %4 = vector.load %arg3[%c0_2, %c0_3, %c0_4] : memref<1x32x96xf32, #tpu.memory_space<vmem>>, vector<1x32x96xf32>
    %5 = vector.shape_cast %4 : vector<1x32x96xf32> to vector<32x96xf32>
    %cst = arith.constant dense<0.000000e+00> : vector<8x96xf32>
    %6 = tpu.matmul %3, %5, %cst {dimension_numbers = #tpu.dot_dimension_numbers<[1], [0], [0], [1], [0, 0, 1, 1], [], []>} : vector<8x32xf32>, vector<32x96xf32>, vector<8x96xf32> -> vector<8x96xf32>
    %c0_5 = arith.constant 0 : index
    %c0_6 = arith.constant 0 : index
    %c0_7 = arith.constant 0 : index
    %7 = vector.load %arg4[%c0_5, %c0_6, %c0_7] : memref<1x1x96xf32, #tpu.memory_space<vmem>>, vector<1x1x96xf32>
    %8 = vector.shape_cast %7 : vector<1x1x96xf32> to vector<1x96xf32>
    %9 = vector.broadcast %8 : vector<1x96xf32> to vector<8x96xf32>
    %10 = arith.addf %6, %9 : vector<8x96xf32>
    %11 = vector.extract_strided_slice %10 {offsets = [0, 0], sizes = [8, 32], strides = [1, 1]} : vector<8x96xf32> to vector<8x32xf32>
    %12 = vector.extract_strided_slice %10 {offsets = [0, 32], sizes = [8, 32], strides = [1, 1]} : vector<8x96xf32> to vector<8x32xf32>
    %13 = vector.extract_strided_slice %10 {offsets = [0, 64], sizes = [8, 32], strides = [1, 1]} : vector<8x96xf32> to vector<8x32xf32>
    %c0_8 = arith.constant 0 : index
    %c0_9 = arith.constant 0 : index
    %c0_10 = arith.constant 0 : index
    %14 = vector.load %arg5[%c0_8, %c0_9, %c0_10] : memref<1x32x32xf32, #tpu.memory_space<vmem>>, vector<1x32x32xf32>
    %15 = vector.shape_cast %14 : vector<1x32x32xf32> to vector<32x32xf32>
    %cst_11 = arith.constant 0.000000e+00 : f32
    %16 = vector.broadcast %cst_11 : f32 to vector<8x32xf32>
    %17 = vector.extract_strided_slice %11 {offsets = [0, 0], sizes = [8, 8], strides = [1, 1]} : vector<8x32xf32> to vector<8x8xf32>
    %cst_12 = arith.constant 0.353553385 : f32
    %18 = vector.broadcast %cst_12 : f32 to vector<8x8xf32>
    %19 = arith.mulf %17, %18 : vector<8x8xf32>
    %20 = vector.extract_strided_slice %12 {offsets = [0, 0], sizes = [8, 8], strides = [1, 1]} : vector<8x32xf32> to vector<8x8xf32>
    %21 = vector.extract_strided_slice %13 {offsets = [0, 0], sizes = [8, 8], strides = [1, 1]} : vector<8x32xf32> to vector<8x8xf32>
    %cst_13 = arith.constant dense<0.000000e+00> : vector<8x8xf32>
    %22 = tpu.matmul %19, %20, %cst_13 {dimension_numbers = #tpu.dot_dimension_numbers<[1], [1], [0], [0], [0, 0, 1, 0], [], []>} : vector<8x8xf32>, vector<8x8xf32>, vector<8x8xf32> -> vector<8x8xf32>
    %cst_14 = arith.constant dense<0xFF800000> : vector<8xf32>
    %23 = vector.multi_reduction <maximumf>, %22, %cst_14 [1] : vector<8x8xf32> to vector<8xf32>
    %24 = vector.shape_cast %23 : vector<8xf32> to vector<8x1xf32>
    %25 = vector.broadcast %24 : vector<8x1xf32> to vector<8x8xf32>
    %26 = arith.subf %22, %25 : vector<8x8xf32>
    %27 = math.exp %26 : vector<8x8xf32>
    %cst_15 = arith.constant dense<0.000000e+00> : vector<8xf32>
    %28 = vector.multi_reduction <add>, %27, %cst_15 [1] : vector<8x8xf32> to vector<8xf32>
    %29 = vector.shape_cast %28 : vector<8xf32> to vector<8x1xf32>
    %30 = tpu.reciprocal %29 : vector<8x1xf32> -> vector<8x1xf32>
    %31 = vector.broadcast %30 : vector<8x1xf32> to vector<8x8xf32>
    %32 = arith.mulf %27, %31 : vector<8x8xf32>
    %cst_16 = arith.constant dense<0.000000e+00> : vector<8x8xf32>
    %33 = tpu.matmul %32, %21, %cst_16 {dimension_numbers = #tpu.dot_dimension_numbers<[1], [0], [0], [1], [0, 0, 1, 1], [], []>} : vector<8x8xf32>, vector<8x8xf32>, vector<8x8xf32> -> vector<8x8xf32>
    %34 = vector.extract_strided_slice %15 {offsets = [0, 0], sizes = [8, 32], strides = [1, 1]} : vector<32x32xf32> to vector<8x32xf32>
    %cst_17 = arith.constant dense<0.000000e+00> : vector<8x32xf32>
    %35 = tpu.matmul %33, %34, %cst_17 {dimension_numbers = #tpu.dot_dimension_numbers<[1], [0], [0], [1], [0, 0, 1, 1], [], []>} : vector<8x8xf32>, vector<8x32xf32>, vector<8x32xf32> -> vector<8x32xf32>
    %36 = arith.addf %16, %35 : vector<8x32xf32>
    %37 = vector.extract_strided_slice %11 {offsets = [0, 8], sizes = [8, 8], strides = [1, 1]} : vector<8x32xf32> to vector<8x8xf32>
    %cst_18 = arith.constant 0.353553385 : f32
    %38 = vector.broadcast %cst_18 : f32 to vector<8x8xf32>
    %39 = arith.mulf %37, %38 : vector<8x8xf32>
    %40 = vector.extract_strided_slice %12 {offsets = [0, 8], sizes = [8, 8], strides = [1, 1]} : vector<8x32xf32> to vector<8x8xf32>
    %41 = vector.extract_strided_slice %13 {offsets = [0, 8], sizes = [8, 8], strides = [1, 1]} : vector<8x32xf32> to vector<8x8xf32>
    %cst_19 = arith.constant dense<0.000000e+00> : vector<8x8xf32>
    %42 = tpu.matmul %39, %40, %cst_19 {dimension_numbers = #tpu.dot_dimension_numbers<[1], [1], [0], [0], [0, 0, 1, 0], [], []>} : vector<8x8xf32>, vector<8x8xf32>, vector<8x8xf32> -> vector<8x8xf32>
    %cst_20 = arith.constant dense<0xFF800000> : vector<8xf32>
    %43 = vector.multi_reduction <maximumf>, %42, %cst_20 [1] : vector<8x8xf32> to vector<8xf32>
    %44 = vector.shape_cast %43 : vector<8xf32> to vector<8x1xf32>
    %45 = vector.broadcast %44 : vector<8x1xf32> to vector<8x8xf32>
    %46 = arith.subf %42, %45 : vector<8x8xf32>
    %47 = math.exp %46 : vector<8x8xf32>
    %cst_21 = arith.constant dense<0.000000e+00> : vector<8xf32>
    %48 = vector.multi_reduction <add>, %47, %cst_21 [1] : vector<8x8xf32> to vector<8xf32>
    %49 = vector.shape_cast %48 : vector<8xf32> to vector<8x1xf32>
    %50 = tpu.reciprocal %49 : vector<8x1xf32> -> vector<8x1xf32>
    %51 = vector.broadcast %50 : vector<8x1xf32> to vector<8x8xf32>
    %52 = arith.mulf %47, %51 : vector<8x8xf32>
    %cst_22 = arith.constant dense<0.000000e+00> : vector<8x8xf32>
    %53 = tpu.matmul %52, %41, %cst_22 {dimension_numbers = #tpu.dot_dimension_numbers<[1], [0], [0], [1], [0, 0, 1, 1], [], []>} : vector<8x8xf32>, vector<8x8xf32>, vector<8x8xf32> -> vector<8x8xf32>
    %54 = vector.extract_strided_slice %15 {offsets = [8, 0], sizes = [8, 32], strides = [1, 1]} : vector<32x32xf32> to vector<8x32xf32>
    %cst_23 = arith.constant dense<0.000000e+00> : vector<8x32xf32>
    %55 = tpu.matmul %53, %54, %cst_23 {dimension_numbers = #tpu.dot_dimension_numbers<[1], [0], [0], [1], [0, 0, 1, 1], [], []>} : vector<8x8xf32>, vector<8x32xf32>, vector<8x32xf32> -> vector<8x32xf32>
    %56 = arith.addf %36, %55 : vector<8x32xf32>
    %57 = vector.extract_strided_slice %11 {offsets = [0, 16], sizes = [8, 8], strides = [1, 1]} : vector<8x32xf32> to vector<8x8xf32>
    %cst_24 = arith.constant 0.353553385 : f32
    %58 = vector.broadcast %cst_24 : f32 to vector<8x8xf32>
    %59 = arith.mulf %57, %58 : vector<8x8xf32>
    %60 = vector.extract_strided_slice %12 {offsets = [0, 16], sizes = [8, 8], strides = [1, 1]} : vector<8x32xf32> to vector<8x8xf32>
    %61 = vector.extract_strided_slice %13 {offsets = [0, 16], sizes = [8, 8], strides = [1, 1]} : vector<8x32xf32> to vector<8x8xf32>
    %cst_25 = arith.constant dense<0.000000e+00> : vector<8x8xf32>
    %62 = tpu.matmul %59, %60, %cst_25 {dimension_numbers = #tpu.dot_dimension_numbers<[1], [1], [0], [0], [0, 0, 1, 0], [], []>} : vector<8x8xf32>, vector<8x8xf32>, vector<8x8xf32> -> vector<8x8xf32>
    %cst_26 = arith.constant dense<0xFF800000> : vector<8xf32>
    %63 = vector.multi_reduction <maximumf>, %62, %cst_26 [1] : vector<8x8xf32> to vector<8xf32>
    %64 = vector.shape_cast %63 : vector<8xf32> to vector<8x1xf32>
    %65 = vector.broadcast %64 : vector<8x1xf32> to vector<8x8xf32>
    %66 = arith.subf %62, %65 : vector<8x8xf32>
    %67 = math.exp %66 : vector<8x8xf32>
    %cst_27 = arith.constant dense<0.000000e+00> : vector<8xf32>
    %68 = vector.multi_reduction <add>, %67, %cst_27 [1] : vector<8x8xf32> to vector<8xf32>
    %69 = vector.shape_cast %68 : vector<8xf32> to vector<8x1xf32>
    %70 = tpu.reciprocal %69 : vector<8x1xf32> -> vector<8x1xf32>
    %71 = vector.broadcast %70 : vector<8x1xf32> to vector<8x8xf32>
    %72 = arith.mulf %67, %71 : vector<8x8xf32>
    %cst_28 = arith.constant dense<0.000000e+00> : vector<8x8xf32>
    %73 = tpu.matmul %72, %61, %cst_28 {dimension_numbers = #tpu.dot_dimension_numbers<[1], [0], [0], [1], [0, 0, 1, 1], [], []>} : vector<8x8xf32>, vector<8x8xf32>, vector<8x8xf32> -> vector<8x8xf32>
    %74 = vector.extract_strided_slice %15 {offsets = [16, 0], sizes = [8, 32], strides = [1, 1]} : vector<32x32xf32> to vector<8x32xf32>
    %cst_29 = arith.constant dense<0.000000e+00> : vector<8x32xf32>
    %75 = tpu.matmul %73, %74, %cst_29 {dimension_numbers = #tpu.dot_dimension_numbers<[1], [0], [0], [1], [0, 0, 1, 1], [], []>} : vector<8x8xf32>, vector<8x32xf32>, vector<8x32xf32> -> vector<8x32xf32>
    %76 = arith.addf %56, %75 : vector<8x32xf32>
    %77 = vector.extract_strided_slice %11 {offsets = [0, 24], sizes = [8, 8], strides = [1, 1]} : vector<8x32xf32> to vector<8x8xf32>
    %cst_30 = arith.constant 0.353553385 : f32
    %78 = vector.broadcast %cst_30 : f32 to vector<8x8xf32>
    %79 = arith.mulf %77, %78 : vector<8x8xf32>
    %80 = vector.extract_strided_slice %12 {offsets = [0, 24], sizes = [8, 8], strides = [1, 1]} : vector<8x32xf32> to vector<8x8xf32>
    %81 = vector.extract_strided_slice %13 {offsets = [0, 24], sizes = [8, 8], strides = [1, 1]} : vector<8x32xf32> to vector<8x8xf32>
    %cst_31 = arith.constant dense<0.000000e+00> : vector<8x8xf32>
    %82 = tpu.matmul %79, %80, %cst_31 {dimension_numbers = #tpu.dot_dimension_numbers<[1], [1], [0], [0], [0, 0, 1, 0], [], []>} : vector<8x8xf32>, vector<8x8xf32>, vector<8x8xf32> -> vector<8x8xf32>
    %cst_32 = arith.constant dense<0xFF800000> : vector<8xf32>
    %83 = vector.multi_reduction <maximumf>, %82, %cst_32 [1] : vector<8x8xf32> to vector<8xf32>
    %84 = vector.shape_cast %83 : vector<8xf32> to vector<8x1xf32>
    %85 = vector.broadcast %84 : vector<8x1xf32> to vector<8x8xf32>
    %86 = arith.subf %82, %85 : vector<8x8xf32>
    %87 = math.exp %86 : vector<8x8xf32>
    %cst_33 = arith.constant dense<0.000000e+00> : vector<8xf32>
    %88 = vector.multi_reduction <add>, %87, %cst_33 [1] : vector<8x8xf32> to vector<8xf32>
    %89 = vector.shape_cast %88 : vector<8xf32> to vector<8x1xf32>
    %90 = tpu.reciprocal %89 : vector<8x1xf32> -> vector<8x1xf32>
    %91 = vector.broadcast %90 : vector<8x1xf32> to vector<8x8xf32>
    %92 = arith.mulf %87, %91 : vector<8x8xf32>
    %cst_34 = arith.constant dense<0.000000e+00> : vector<8x8xf32>
    %93 = tpu.matmul %92, %81, %cst_34 {dimension_numbers = #tpu.dot_dimension_numbers<[1], [0], [0], [1], [0, 0, 1, 1], [], []>} : vector<8x8xf32>, vector<8x8xf32>, vector<8x8xf32> -> vector<8x8xf32>
    %94 = vector.extract_strided_slice %15 {offsets = [24, 0], sizes = [8, 32], strides = [1, 1]} : vector<32x32xf32> to vector<8x32xf32>
    %cst_35 = arith.constant dense<0.000000e+00> : vector<8x32xf32>
    %95 = tpu.matmul %93, %94, %cst_35 {dimension_numbers = #tpu.dot_dimension_numbers<[1], [0], [0], [1], [0, 0, 1, 1], [], []>} : vector<8x8xf32>, vector<8x32xf32>, vector<8x32xf32> -> vector<8x32xf32>
    %96 = arith.addf %76, %95 : vector<8x32xf32>
    %c0_36 = arith.constant 0 : index
    %c0_37 = arith.constant 0 : index
    %c0_38 = arith.constant 0 : index
    %97 = vector.load %arg6[%c0_36, %c0_37, %c0_38] : memref<1x1x32xf32, #tpu.memory_space<vmem>>, vector<1x1x32xf32>
    %98 = vector.shape_cast %97 : vector<1x1x32xf32> to vector<1x32xf32>
    %99 = vector.broadcast %98 : vector<1x32xf32> to vector<8x32xf32>
    %100 = arith.addf %96, %99 : vector<8x32xf32>
    %c0_39 = arith.constant 0 : index
    %c0_40 = arith.constant 0 : index
    %c0_41 = arith.constant 0 : index
    %101 = vector.load %arg7[%c0_39, %c0_40, %c0_41] : memref<1x1x1xf32, #tpu.memory_space<vmem>>, vector<1x1x1xf32>
    %102 = vector.shape_cast %101 : vector<1x1x1xf32> to vector<1x1xf32>
    %103 = vector.broadcast %102 : vector<1x1xf32> to vector<8x32xf32>
    %104 = arith.mulf %103, %100 : vector<8x32xf32>
    %105 = arith.addf %3, %104 : vector<8x32xf32>
    %c0_42 = arith.constant 0 : index
    %c0_43 = arith.constant 0 : index
    %c0_44 = arith.constant 0 : index
    %106 = vector.load %arg8[%c0_42, %c0_43, %c0_44] : memref<1x1x32xf32, #tpu.memory_space<vmem>>, vector<1x1x32xf32>
    %107 = vector.shape_cast %106 : vector<1x1x32xf32> to vector<1x32xf32>
    %c0_45 = arith.constant 0 : index
    %c0_46 = arith.constant 0 : index
    %c0_47 = arith.constant 0 : index
    %108 = vector.load %arg9[%c0_45, %c0_46, %c0_47] : memref<1x1x32xf32, #tpu.memory_space<vmem>>, vector<1x1x32xf32>
    %109 = vector.shape_cast %108 : vector<1x1x32xf32> to vector<1x32xf32>
    %cst_48 = arith.constant dense<0.000000e+00> : vector<8xf32>
    %110 = vector.multi_reduction <add>, %105, %cst_48 [1] : vector<8x32xf32> to vector<8xf32>
    %111 = vector.shape_cast %110 : vector<8xf32> to vector<8x1xf32>
    %cst_49 = arith.constant 3.200000e+01 : f32
    %112 = vector.broadcast %cst_49 : f32 to vector<8x1xf32>
    %113 = arith.divf %111, %112 : vector<8x1xf32>
    %114 = vector.broadcast %113 : vector<8x1xf32> to vector<8x32xf32>
    %115 = arith.subf %105, %114 : vector<8x32xf32>
    %116 = arith.mulf %115, %115 : vector<8x32xf32>
    %cst_50 = arith.constant dense<0.000000e+00> : vector<8xf32>
    %117 = vector.multi_reduction <add>, %116, %cst_50 [1] : vector<8x32xf32> to vector<8xf32>
    %118 = vector.shape_cast %117 : vector<8xf32> to vector<8x1xf32>
    %cst_51 = arith.constant 3.200000e+01 : f32
    %119 = vector.broadcast %cst_51 : f32 to vector<8x1xf32>
    %120 = arith.divf %118, %119 : vector<8x1xf32>
    %cst_52 = arith.constant 9.99999974E-6 : f32
    %121 = vector.broadcast %cst_52 : f32 to vector<8x1xf32>
    %122 = arith.addf %120, %121 : vector<8x1xf32>
    %123 = math.rsqrt %122 : vector<8x1xf32>
    %124 = vector.broadcast %123 : vector<8x1xf32> to vector<8x32xf32>
    %125 = arith.mulf %115, %124 : vector<8x32xf32>
    %126 = vector.broadcast %107 : vector<1x32xf32> to vector<8x32xf32>
    %127 = arith.mulf %125, %126 : vector<8x32xf32>
    %128 = vector.broadcast %109 : vector<1x32xf32> to vector<8x32xf32>
    %129 = arith.addf %127, %128 : vector<8x32xf32>
    %c0_53 = arith.constant 0 : index
    %c0_54 = arith.constant 0 : index
    %c0_55 = arith.constant 0 : index
    %130 = vector.load %arg10[%c0_53, %c0_54, %c0_55] : memref<1x32x64xf32, #tpu.memory_space<vmem>>, vector<1x32x64xf32>
    %131 = vector.shape_cast %130 : vector<1x32x64xf32> to vector<32x64xf32>
    %cst_56 = arith.constant dense<0.000000e+00> : vector<8x64xf32>
    %132 = tpu.matmul %129, %131, %cst_56 {dimension_numbers = #tpu.dot_dimension_numbers<[1], [0], [0], [1], [0, 0, 1, 1], [], []>} : vector<8x32xf32>, vector<32x64xf32>, vector<8x64xf32> -> vector<8x64xf32>
    %c0_57 = arith.constant 0 : index
    %c0_58 = arith.constant 0 : index
    %c0_59 = arith.constant 0 : index
    %133 = vector.load %arg11[%c0_57, %c0_58, %c0_59] : memref<1x1x64xf32, #tpu.memory_space<vmem>>, vector<1x1x64xf32>
    %134 = vector.shape_cast %133 : vector<1x1x64xf32> to vector<1x64xf32>
    %135 = vector.broadcast %134 : vector<1x64xf32> to vector<8x64xf32>
    %136 = arith.addf %132, %135 : vector<8x64xf32>
    %cst_60 = arith.constant 5.000000e-01 : f32
    %137 = vector.broadcast %cst_60 : f32 to vector<8x64xf32>
    %138 = arith.mulf %137, %136 : vector<8x64xf32>
    %cst_61 = arith.constant 4.471500e-02 : f32
    %139 = vector.broadcast %cst_61 : f32 to vector<8x64xf32>
    %140 = arith.mulf %139, %136 : vector<8x64xf32>
    %141 = arith.mulf %140, %136 : vector<8x64xf32>
    %142 = arith.mulf %141, %136 : vector<8x64xf32>
    %143 = arith.addf %136, %142 : vector<8x64xf32>
    %cst_62 = arith.constant 0.797884583 : f32
    %144 = vector.broadcast %cst_62 : f32 to vector<8x64xf32>
    %145 = arith.mulf %144, %143 : vector<8x64xf32>
    %146 = math.tanh %145 : vector<8x64xf32>
    %cst_63 = arith.constant 1.000000e+00 : f32
    %147 = vector.broadcast %cst_63 : f32 to vector<8x64xf32>
    %148 = arith.addf %147, %146 : vector<8x64xf32>
    %149 = arith.mulf %138, %148 : vector<8x64xf32>
    %c0_64 = arith.constant 0 : index
    %c0_65 = arith.constant 0 : index
    %c0_66 = arith.constant 0 : index
    %150 = vector.load %arg12[%c0_64, %c0_65, %c0_66] : memref<1x64x32xf32, #tpu.memory_space<vmem>>, vector<1x64x32xf32>
    %151 = vector.shape_cast %150 : vector<1x64x32xf32> to vector<64x32xf32>
    %cst_67 = arith.constant dense<0.000000e+00> : vector<8x32xf32>
    %152 = tpu.matmul %149, %151, %cst_67 {dimension_numbers = #tpu.dot_dimension_numbers<[1], [0], [0], [1], [0, 0, 1, 1], [], []>} : vector<8x64xf32>, vector<64x32xf32>, vector<8x32xf32> -> vector<8x32xf32>
    %c0_68 = arith.constant 0 : index
    %c0_69 = arith.constant 0 : index
    %c0_70 = arith.constant 0 : index
    %153 = vector.load %arg13[%c0_68, %c0_69, %c0_70] : memref<1x1x32xf32, #tpu.memory_space<vmem>>, vector<1x1x32xf32>
    %154 = vector.shape_cast %153 : vector<1x1x32xf32> to vector<1x32xf32>
    %155 = vector.broadcast %154 : vector<1x32xf32> to vector<8x32xf32>
    %156 = arith.addf %152, %155 : vector<8x32xf32>
    %c0_71 = arith.constant 0 : index
    %c0_72 = arith.constant 0 : index
    %c0_73 = arith.constant 0 : index
    %157 = vector.load %arg14[%c0_71, %c0_72, %c0_73] : memref<1x1x1xf32, #tpu.memory_space<vmem>>, vector<1x1x1xf32>
    %158 = vector.shape_cast %157 : vector<1x1x1xf32> to vector<1x1xf32>
    %159 = vector.broadcast %158 : vector<1x1xf32> to vector<8x32xf32>
    %160 = arith.mulf %159, %156 : vector<8x32xf32>
    %161 = arith.addf %129, %160 : vector<8x32xf32>
    %c0_74 = arith.constant 0 : index
    %c0_75 = arith.constant 0 : index
    %c0_76 = arith.constant 0 : index
    %162 = vector.load %arg15[%c0_74, %c0_75, %c0_76] : memref<1x1x32xf32, #tpu.memory_space<vmem>>, vector<1x1x32xf32>
    %163 = vector.shape_cast %162 : vector<1x1x32xf32> to vector<1x32xf32>
    %c0_77 = arith.constant 0 : index
    %c0_78 = arith.constant 0 : index
    %c0_79 = arith.constant 0 : index
    %164 = vector.load %arg16[%c0_77, %c0_78, %c0_79] : memref<1x1x32xf32, #tpu.memory_space<vmem>>, vector<1x1x32xf32>
    %165 = vector.shape_cast %164 : vector<1x1x32xf32> to vector<1x32xf32>
    %cst_80 = arith.constant dense<0.000000e+00> : vector<8xf32>
    %166 = vector.multi_reduction <add>, %161, %cst_80 [1] : vector<8x32xf32> to vector<8xf32>
    %167 = vector.shape_cast %166 : vector<8xf32> to vector<8x1xf32>
    %cst_81 = arith.constant 3.200000e+01 : f32
    %168 = vector.broadcast %cst_81 : f32 to vector<8x1xf32>
    %169 = arith.divf %167, %168 : vector<8x1xf32>
    %170 = vector.broadcast %169 : vector<8x1xf32> to vector<8x32xf32>
    %171 = arith.subf %161, %170 : vector<8x32xf32>
    %172 = arith.mulf %171, %171 : vector<8x32xf32>
    %cst_82 = arith.constant dense<0.000000e+00> : vector<8xf32>
    %173 = vector.multi_reduction <add>, %172, %cst_82 [1] : vector<8x32xf32> to vector<8xf32>
    %174 = vector.shape_cast %173 : vector<8xf32> to vector<8x1xf32>
    %cst_83 = arith.constant 3.200000e+01 : f32
    %175 = vector.broadcast %cst_83 : f32 to vector<8x1xf32>
    %176 = arith.divf %174, %175 : vector<8x1xf32>
    %cst_84 = arith.constant 9.99999974E-6 : f32
    %177 = vector.broadcast %cst_84 : f32 to vector<8x1xf32>
    %178 = arith.addf %176, %177 : vector<8x1xf32>
    %179 = math.rsqrt %178 : vector<8x1xf32>
    %180 = vector.broadcast %179 : vector<8x1xf32> to vector<8x32xf32>
    %181 = arith.mulf %171, %180 : vector<8x32xf32>
    %182 = vector.broadcast %163 : vector<1x32xf32> to vector<8x32xf32>
    %183 = arith.mulf %181, %182 : vector<8x32xf32>
    %184 = vector.broadcast %165 : vector<1x32xf32> to vector<8x32xf32>
    %185 = arith.addf %183, %184 : vector<8x32xf32>
    %c0_85 = arith.constant 0 : index
    %c0_86 = arith.constant 0 : index
    %186 = vector.load %arg18[%c0_85, %c0_86] : memref<8x32xf32, #tpu.memory_space<vmem>>, vector<8x32xf32>
    tpu.vector_store %arg18[%c0_85, %c0_86], %185 {strides = array<i32>} : memref<8x32xf32, #tpu.memory_space<vmem>>, vector<8x32xf32>,
    %c1_i32 = arith.constant 1 : i32
    %187 = arith.cmpi eq, %arg1, %c1_i32 : i32
    %188 = arith.extui %187 : i1 to i32
    %c0_i32_87 = arith.constant 0 : i32
    %189 = arith.cmpi ne, %188, %c0_i32_87 : i32
    scf.if %189 {
      %c0_88 = arith.constant 0 : index
      %c0_89 = arith.constant 0 : index
      %c0_90 = arith.constant 0 : index
      %190 = vector.load %arg17[%c0_88, %c0_89, %c0_90] : memref<1x8x32xf32, #tpu.memory_space<vmem>>, vector<1x8x32xf32>
      %191 = vector.shape_cast %190 : vector<1x8x32xf32> to vector<8x32xf32>
      %192 = vector.shape_cast %185 : vector<8x32xf32> to vector<1x8x32xf32>
      tpu.vector_store %arg17[%c0_88, %c0_89, %c0_90], %192 {strides = array<i32>} : memref<1x8x32xf32, #tpu.memory_space<vmem>>, vector<1x8x32xf32>,
    } else {
    }
    return
  }
  func.func @transform_0(%arg0: i32, %arg1: i32) -> (i32, i32, i32) {
    %c0_i32 = arith.constant 0 : i32
    %c0_i32_0 = arith.constant 0 : i32
    %c0_i32_1 = arith.constant 0 : i32
    return %arg0, %c0_i32, %c0_i32_0 : i32, i32, i32
  }
  func.func @transform_1(%arg0: i32, %arg1: i32) -> (i32, i32, i32) {
    %c0_i32 = arith.constant 0 : i32
    %c0_i32_0 = arith.constant 0 : i32
    %c0_i32_1 = arith.constant 0 : i32
    return %arg1, %c0_i32, %c0_i32_0 : i32, i32, i32
  }
  func.func @transform_2(%arg0: i32, %arg1: i32) -> (i32, i32, i32) {
    %c0_i32 = arith.constant 0 : i32
    %c0_i32_0 = arith.constant 0 : i32
    %c0_i32_1 = arith.constant 0 : i32
    return %arg1, %c0_i32, %c0_i32_0 : i32, i32, i32
  }
  func.func @transform_3(%arg0: i32, %arg1: i32) -> (i32, i32, i32) {
    %c0_i32 = arith.constant 0 : i32
    %c0_i32_0 = arith.constant 0 : i32
    %c0_i32_1 = arith.constant 0 : i32
    return %arg1, %c0_i32, %c0_i32_0 : i32, i32, i32
  }
  func.func @transform_4(%arg0: i32, %arg1: i32) -> (i32, i32, i32) {
    %c0_i32 = arith.constant 0 : i32
    %c0_i32_0 = arith.constant 0 : i32
    %c0_i32_1 = arith.constant 0 : i32
    return %arg1, %c0_i32, %c0_i32_0 : i32, i32, i32
  }
  func.func @transform_5(%arg0: i32, %arg1: i32) -> (i32, i32, i32) {
    %c0_i32 = arith.constant 0 : i32
    %c0_i32_0 = arith.constant 0 : i32
    %c0_i32_1 = arith.constant 0 : i32
    return %arg1, %c0_i32, %c0_i32_0 : i32, i32, i32
  }
  func.func @transform_6(%arg0: i32, %arg1: i32) -> (i32, i32, i32) {
    %c0_i32 = arith.constant 0 : i32
    %c0_i32_0 = arith.constant 0 : i32
    %c0_i32_1 = arith.constant 0 : i32
    return %arg1, %c0_i32, %c0_i32_0 : i32, i32, i32
  }
  func.func @transform_7(%arg0: i32, %arg1: i32) -> (i32, i32, i32) {
    %c0_i32 = arith.constant 0 : i32
    %c0_i32_0 = arith.constant 0 : i32
    %c0_i32_1 = arith.constant 0 : i32
    return %arg1, %c0_i32, %c0_i32_0 : i32, i32, i32
  }
  func.func @transform_8(%arg0: i32, %arg1: i32) -> (i32, i32, i32) {
    %c0_i32 = arith.constant 0 : i32
    %c0_i32_0 = arith.constant 0 : i32
    %c0_i32_1 = arith.constant 0 : i32
    return %arg1, %c0_i32, %c0_i32_0 : i32, i32, i32
  }
  func.func @transform_9(%arg0: i32, %arg1: i32) -> (i32, i32, i32) {
    %c0_i32 = arith.constant 0 : i32
    %c0_i32_0 = arith.constant 0 : i32
    %c0_i32_1 = arith.constant 0 : i32
    return %arg1, %c0_i32, %c0_i32_0 : i32, i32, i32
  }
  func.func @transform_10(%arg0: i32, %arg1: i32) -> (i32, i32, i32) {
    %c0_i32 = arith.constant 0 : i32
    %c0_i32_0 = arith.constant 0 : i32
    %c0_i32_1 = arith.constant 0 : i32
    return %arg1, %c0_i32, %c0_i32_0 : i32, i32, i32
  }
  func.func @transform_11(%arg0: i32, %arg1: i32) -> (i32, i32, i32) {
    %c0_i32 = arith.constant 0 : i32
    %c0_i32_0 = arith.constant 0 : i32
    %c0_i32_1 = arith.constant 0 : i32
    return %arg1, %c0_i32, %c0_i32_0 : i32, i32, i32
  }
  func.func @transform_12(%arg0: i32, %arg1: i32) -> (i32, i32, i32) {
    %c0_i32 = arith.constant 0 : i32
    %c0_i32_0 = arith.constant 0 : i32
    %c0_i32_1 = arith.constant 0 : i32
    return %arg1, %c0_i32, %c0_i32_0 : i32, i32, i32
  }
  func.func @transform_13(%arg0: i32, %arg1: i32) -> (i32, i32, i32) {
    %c0_i32 = arith.constant 0 : i32
    %c0_i32_0 = arith.constant 0 : i32
    %c0_i32_1 = arith.constant 0 : i32
    return %arg1, %c0_i32, %c0_i32_0 : i32, i32, i32
  }
  func.func @transform_14(%arg0: i32, %arg1: i32) -> (i32, i32, i32) {
    %c0_i32 = arith.constant 0 : i32
    %c0_i32_0 = arith.constant 0 : i32
    %c0_i32_1 = arith.constant 0 : i32
    return %arg1, %c0_i32, %c0_i32_0 : i32, i32, i32
  }
  func.func @transform_15(%arg0: i32, %arg1: i32) -> (i32, i32, i32) {
    %c0_i32 = arith.constant 0 : i32
    %c0_i32_0 = arith.constant 0 : i32
    %c0_i32_1 = arith.constant 0 : i32
    return %arg0, %c0_i32, %c0_i32_0 : i32, i32, i32
  }
}

</mosaic_0001>

<bundles_post_ra>
// kernel: tpu_custom_call.1
= control target key start
LH: loop header
LB: loop body
LE: loop exit
PB: predicated region body
PF: predicated region fallthrough
CT: control target
= control target key end

     0   :  { %s2528_s0 = inlined_call_operand.hbm [shape: f32[2,8,32], index: 0, kind: input, shape index: {}]   ;;  %s2529_s1 = inlined_call_operand.vmem [shape: f32[2,32,96], index: 1, kind: input, shape index: {}]   ;;  %s2530_s2 = inlined_call_operand.vmem [shape: f32[2,1,96], index: 2, kind: input, shape index: {}]   ;;  %s2531_s3 = inlined_call_operand.vmem [shape: f32[2,32,32], index: 3, kind: input, shape index: {}]   ;;  %s2532_s4 = inlined_call_operand.vmem [shape: f32[2,1,32], index: 4, kind: input, shape index: {}]   ;;  %s2533_s5 = inlined_call_operand.vmem [shape: f32[2,1,1], index: 5, kind: input, shape index: {}]   ;;  %s2534_s6 = inlined_call_operand.vmem [shape: f32[2,1,32], index: 6, kind: input, shape index: {}]   ;;  %s2535_s7 = inlined_call_operand.vmem [shape: f32[2,1,32], index: 7, kind: input, shape index: {}]   ;;  %s2536_s8 = inlined_call_operand.vmem [shape: f32[2,32,64], index: 8, kind: input, shape index: {}]   ;;  %s2537_s9 = inlined_call_operand.vmem [shape: f32[2,1,64], index: 9, kind: input, shape index: {}]   ;;  %s2538_s10 = inlined_call_operand.vmem [shape: f32[2,64,32], index: 10, kind: input, shape index: {}]   ;;  %s2539_s11 = inlined_call_operand.hbm [shape: f32[2,1,32], index: 11, kind: input, shape index: {}]   ;;  %s2540_s12 = inlined_call_operand.vmem [shape: f32[2,1,1], index: 12, kind: input, shape index: {}]   ;;  %s2541_s13 = inlined_call_operand.vmem [shape: f32[2,1,32], index: 13, kind: input, shape index: {}]   ;;  %s2542_s14 = inlined_call_operand.vmem [shape: f32[2,1,32], index: 14, kind: input, shape index: {}]   ;;  %s2543_s15 = inlined_call_operand.hbm [shape: f32[2,8,32], index: 15, kind: output, shape index: {}]  }
   0x1   :  { %2560 = sst [smem:[#allocation28_spill]] %s2528_s0 }
   0x2   :  { %2561 = sst [smem:[#allocation29_spill]] %s2529_s1 }
   0x3   :  { %2562 = sst [smem:[#allocation30_spill]] %s2531_s3 }
   0x4   :  { %2563 = sst [smem:[#allocation31_spill]] %s2533_s5 }
   0x5   :  { %2564 = sst [smem:[#allocation32_spill]] %s2534_s6 }
   0x6   :  { %2565 = sst [smem:[#allocation33_spill]] %s2535_s7 }
   0x7   :  { %2566 = sst [smem:[#allocation34_spill]] %s2536_s8 }
   0x8   :  { %2567 = sst [smem:[#allocation35_spill]] %s2537_s9 }
   0x9   :  { %2568 = sst [smem:[#allocation36_spill]] %s2538_s10 }
   0xa   :  { %2569 = sst [smem:[#allocation37_spill]] %s2539_s11 }
   0xb   :  { %2570 = sst [smem:[#allocation38_spill]] %s2540_s12 }
   0xc   :  { %2571 = sst [smem:[#allocation39_spill]] %s2541_s13 }
   0xd   :  { %2572 = sst [smem:[#allocation40_spill]] %s2542_s14 }
   0xe   :  { %2573 = sst [smem:[#allocation41_spill]] %s2543_s15 }
   0xf   :  { %20 = vsyncpa [#allocation4], 0 }
  0x10   :  { %22 = vsyncpa [#allocation4 + $0x1], 0 }
  0x11   :  { %23 = vsyncpa [#allocation7], 0 }
  0x12   :  { %25 = vsyncpa [#allocation7 + $0x1], 0 }
  0x13   :  { %26 = vsyncpa [#allocation5], 0 }
  0x14   :  { %28 = vsyncpa [#allocation5 + $0x1], 0  ;;  %s2120_s18 = smov 0   ;;  %s2122_s19 = smov 0  }
  0x15   :  { %s2124_s20 = smov 0   ;;  %s2126_s21 = smov 0  }
  0x16   :  { %s2128_s22 = smov 0   ;;  %s2130_s23 = smov 0  }
  0x17   :  { %s2132_s24 = smov 0   ;;  %s2134_s25 = smov 0  }
  0x18   :  { %s2136_s26 = smov 0   ;;  %s2138_s27 = smov 0  }
  0x19   :  { %s2140_s28 = smov 0  }
  0x1a LB: > { %2574 = sst [smem:[#allocation12_spill]] %s1989_s19  ;;  %s1638_s29 = sadd.s32 4294967295, %s2025_s28   ;;  %s2025_s28 = sphi %s2140_s28, %s34_s28   ;;  %s2021_s27 = sphi %s2138_s27, %s2641_s27   ;;  %s2017_s26 = sphi %s2136_s26, %s2640_s26   ;;  %s2013_s25 = sphi %s2134_s25, %s2639_s25   ;;  %s2009_s24 = sphi %s2132_s24, %s2638_s24   ;;  %s2005_s23 = sphi %s2130_s23, %s2637_s23   ;;  %s2001_s22 = sphi %s2128_s22, %s2636_s22   ;;  %s1997_s21 = sphi %s2126_s21, %s2635_s21   ;;  %s1993_s20 = sphi %s2124_s20, %s2634_s20   ;;  %s1989_s19 = sphi %s2122_s19, %s2633_s19   ;;  %s1985_s18 = sphi %s2120_s18, %s2632_s18  }
  0x1b   : > { %2575 = sst [smem:[#allocation13_spill]] %s1993_s20  ;;  %s1639_s30 = sadd.s32 4294967294, %s2025_s28  }
  0x1c   : > { %2576 = sst [smem:[#allocation14_spill]] %s1997_s21  ;;  %p60_p0 = scmp.ne.s32.totalorder %s2005_s23, %s2001_s22 }
  0x1d   : > { %2577 = sst [smem:[#allocation15_spill]] %s2001_s22  ;;  %p61_p1 = scmp.eq.s32.totalorder %s2025_s28, 0 }
  0x1e   : > { %2578 = sst [smem:[#allocation16_spill]] %s2005_s23  ;;  %p66_p2 = scmp.ne.s32.totalorder %s2001_s22, %s1997_s21 }
  0x1f   : > { %2579 = sst [smem:[#allocation17_spill]] %s2013_s25  ;;  %p2184_p3 = scmp.eq.s32.totalorder %s1638_s29, 0 }
  0x20   : > { %2580 = sst [smem:[#allocation18_spill]] %s2017_s26  ;;  %p2190_p4 = por %p61_p1, %p60_p0 }
  0x21   : > { %2581 = sst [smem:[#allocation19_spill]] %s2021_s27  ;;  %p454_p5 = scmp.eq.s32.totalorder %s1638_s29, 3 }
  0x22   : > { %2582 = sst [smem:[#allocation20_spill]] %s2025_s28  ;;  %p2196_p6 = por %p2184_p3, %p66_p2 }
  0x23   : > { %p460_p7 = scmp.eq.s32.totalorder %s1639_s30, 3  ;;  %p2200_p8 = por %p454_p5, %p60_p0 }
  0x24   : > { %p1701_p10 = scmp.lt.s32.totalorder %s2025_s28, 4  ;;  %s480_s14 = sand.u32 1, %s2005_s23  }
  0x25   : > { %s2586_s16 = scalar_select %p2200_p8, 1, 0 }
  0x26   : > { %p2204_p9 = por %p460_p7, %p66_p2  ;;  %s1643_s29 = sshll.u32 %s2021_s27, 3 }
  0x27   : > { %2587 = sst [smem:[#allocation21_spill]] %s2586_s16  ;;  %s1642_s13 = sshll.u32 %s480_s14, 3 }
  0x28   : > { %s2588_s21 = scalar_select %p2204_p9, 1, 0 }
  0x29   : > { %s2590_s0 = sld [smem:[#allocation28_spill]]  ;;  %s484_s16 = scalar_lea.vmem [#allocation3], %s1642_s13 }
  0x2a   : > { %2589 = sst [smem:[#allocation22_spill]] %s2588_s21  ;;  %s492_s8 = sshll.u32 %s484_s16, 4  ;;  %s493_s8 = int_to_ptr.vmem [resolvable:$true] %s492_s8 }
  0x2b   : > { %p1691_p11 = pnand %p1701_p10, %p2190_p4  ;;  %p1644_p12 = scmp.ge.s32.totalorder %s2025_s28, 1 }
  0x2c   : > { %p600_p13 = scmp.lt.s32.totalorder %s2025_s28, 5  ;;  %s481_s10 = scalar_lea.sflag [#allocation4], %s480_s14 }
  0x2d   : > { %s43_s13 = sadd.s32 1, %s2017_s26  ;;  %s339_s16 = sadd.s32 1, %s1993_s20 }
  0x2e   : > { %p2220_p0 = pnand %p1644_p12, %p600_p13  ;;  %p44_p2 = scmp.ge.s32.totalorder %s43_s13, 2 }
  0x2f   : > { %s488_s30 = scalar_lea.hbm %s2590_s0, %s1643_s29  ;;  %p346_p5 = scmp.ne.s32.totalorder %s1993_s20, %s1989_s19 }
  0x30   : > { %s490_s9 = sshll.u32 %s488_s30, 4  ;;  %p352_p7 = scmp.ne.s32.totalorder %s1989_s19, %s1985_s18  ;;  %s491_s9 = int_to_ptr.hbm [resolvable:$true] %s490_s9 }
  0x31   : > { %1693 = dma.hbm_to_vmem [thread:$0]  (!%p1691_p11), %s491_s9, 128, %s493_s8, %s481_s10  }
  0x32   : > { %s2643_s13 = smov (%p44_p2, %s43_s13), 0  ;;  %s2593_s25 = sadd.s32 1, %s2021_s27 }
  0x33   : > { %2592 = sst [smem:[#allocation23_spill]] %s2643_s13  ;;  %s2645_s25 = smov (!%p44_p2, %s2593_s25), %s2021_s27 }
  0x34   : > { %s336_s8 = ssub.s32 %s2017_s26, %s2643_s13  ;;  %p2239_p4 = por %p346_p5, %p61_p1 }
  0x35   : > { %p48_p11 = scmp.ge.s32.totalorder %s2645_s25, 2  ;;  %p337_p12 = scmp.eq.s32.totalorder %s336_s8, 0 }
  0x36   : > { %p2245_p13 = por %p352_p7, %p2184_p3  ;;  %s567_s18 = sand.u32 1, %s1993_s20  }
  0x37   : > { %s2647_s25 = smov (%p48_p11, %s2645_s25), 0  ;;  %s2598_s11 = sld [smem:[#allocation37_spill]] }
  0x38   : > { %2596 = sst [smem:[#allocation24_spill]] %s2647_s25  ;;  %s50_s30 = ssub.s32 %s2021_s27, %s2647_s25 }
  0x39   : > { %s2253_s29 = scalar_select %p337_p12, %s1993_s20, %s339_s16  }
  0x3a   : > { %p51_p1 = scmp.eq.s32.totalorder %s50_s30, 0  ;;  %s570_s21 = scalar_lea.vmem [#allocation6], %s567_s18 }
  0x3b   : > { %2597 = sst [smem:[#allocation25_spill]] %s2253_s29  ;;  %s577_s7 = sshll.u32 %s570_s21, 4  ;;  %s578_s7 = int_to_ptr.vmem [resolvable:$true] %s577_s7 }
  0x3c   : > { %s2599_s8 = sadd.s32 1, %s2005_s23  ;;  %p1694_p3 = pnand %p1701_p10, %p2239_p4 }
  0x3d   : > { %s573_s13 = scalar_lea.hbm %s2598_s11, %s2017_s26  ;;  %s568_s5 = scalar_lea.sflag [#allocation7], %s567_s18 }
  0x3e   : > { %s2264_s15 = scalar_select %p51_p1, %s2005_s23, %s2599_s8  }
  0x3f   : > { %s575_s6 = sshll.u32 %s573_s13, 4  ;;  %604 = sbr.rel (%p2220_p0) target bundleno = 2395 (0x95b), region = 80  ;;  %s576_s6 = int_to_ptr.hbm [resolvable:$true] %s575_s6 }
  0x40   : > { %2600 = sst [smem:[#allocation26_spill]] %s2264_s15 }
  0x41   : > { %1696 = dma.hbm_to_vmem [thread:$0]  (!%p1694_p3), %s576_s6, 16, %s578_s7, %s568_s5  }
  0x44   : > { %s2273_s0 = sand.u32 1, %s2001_s22  }
  0x45   : > { %2601 = sst [smem:[#allocation27_spill]] %s2273_s0  ;;  %s1645_s21 = sshll.u32 %s2273_s0, 3 }
  0x46   : > { %s607_s16 = scalar_lea.sflag [#allocation4], %s2273_s0  ;;  %s610_s30 = scalar_lea.vmem [#allocation3], %s1645_s21 }
  0x47   : > { %1972 = dma.done.wait (%p2196_p6), %s607_s16, 128  }
  0x48   : > { %1974 = vsyncadd (%p2196_p6), %s607_s16, 4294967168  ;;  %s616_s5 = sand.u32 1, %s1989_s19  }
  0x49   : > { %s617_s6 = scalar_lea.sflag [#allocation7], %s616_s5  ;;  %s2282_s7 = scalar_lea.vmem [#allocation6], %s616_s5 }
  0x4a   : > { %1976 = dma.done.wait (%p2245_p13), %s617_s6, 16  }
  0x4b   : > { %1978 = vsyncadd (%p2245_p13), %s617_s6, 4294967280  ;;  %p718_p10 = scmp.lt.s32.totalorder %s2009_s24, 1  ;;  %s2602_s1 = sld [smem:[#allocation29_spill]] }
  0x4c   : > { %s2603_s3 = sld [smem:[#allocation30_spill]]  ;;  %s2348_s28 = scalar_lea.vmem [#allocation8], %s1645_s21 }
  0x4d   : > { %s2290_s12 = scalar_select %p718_p10, %s2009_s24, 1 }
  0x4e   : > { %s2607_s5 = sld [smem:[#allocation34_spill]]  ;;  %p1655_p6 = scmp.ne.s32.totalorder %s2009_s24, 0 }
  0x4f   : > { %s1680_s17 = sshll.u32 %s2290_s12, 5  ;;  %s2608_s25 = sld [smem:[#allocation35_spill]] }
  0x50   : > { %s1683_s0 = sshll.u32 %s2290_s12, 6  ;;  %s2609_s15 = sld [smem:[#allocation38_spill]] }
  0x51   : > { %s722_s8 = scalar_lea.vmem %s2602_s1, %s1680_s17  ;;  %s2610_s9 = sld [smem:[#allocation36_spill]] }
  0x52   : > { %s2303_s6 = scalar_lea.vmem %s2603_s3, %s1680_s17  ;;  %s2611_s10 = sld [smem:[#allocation39_spill]] }
  0x54   : > { %s2324_s3 = scalar_lea.vmem %s2607_s5, %s1680_s17  ;;  %s2612_s5 = sld [smem:[#allocation40_spill]] }
  0x55   : > { %s750_s27 = scalar_lea.vmem %s2608_s25, %s2290_s12 }
  0x56   : > { %s758_s22 = scalar_lea.vmem %s2609_s15, %s2290_s12  ;;  %768 = sbr.rel (%p1655_p6) target bundleno = 93 (0x5d), region = 92 }
  0x57   : > { %s2338_s14 = scalar_lea.vmem %s2610_s9, %s1683_s0 }
  0x58   : > { %s761_s19 = scalar_lea.vmem %s2611_s10, %s2290_s12 }
  0x5a   : > { %s764_s1 = scalar_lea.vmem %s2612_s5, %s2290_s12 }
  0x5b   : > { %v769_v0 = vld [vmem:[%s610_s30] sm:$0xff]  ;;  %vm770_vm0 = vcmask 261120  }
  0x5c   : > { %771 = vst.msk [vmem:[#allocation2] sm:$0xff] %vm770_vm0, %v769_v0 }
  0x5d PF: > { %v776_v1 = vld [vmem:[%s722_s8 + $0x18] sm:$0xff]  ;;  %v775_v2 = vld [vmem:[%s722_s8 + $0x10] sm:$0xff]  ;;  %v774_v3 = vld [vmem:[%s722_s8 + $0x8] sm:$0xff]  ;;  %vm781_vm1 = vcmask 261120   ;;  %s2613_s30 = scalar_lea.vmem %s2530_s2, %s2290_s12  ;;  %s2027_s11 = smov 88   ;;  %vm813_vm2 = vcmask 64512  }
  0x5e   : > { %797 = vmatpush.msra.mxu0 %v776_v1  ;;  %v773_v4 = vld [vmem:[%s722_s8] sm:$0xff]  ;;  %s2028_s8 = smov 96   ;;  %s2029_s25 = smov 120  }
  0x5f   : > { %v1805_v6 = vld [vmem:[%s2613_s30] ss:$0 sm:$0xff]  ;;  %s2030_s26 = smov 72   ;;  %s2031_s23 = smov 104  }
  0x60   : > { %798 = vmatpush.msra.mxu0 %v775_v2  ;;  %s2032_s15 = smov 80   ;;  %v805_v10 = vld [vmem:[%s2303_s6] sm:$0xff]  ;;  %s2033_s29 = smov 56  }
  0x61   : > { %1008 = vmatpush.msra.mxu3 %v805_v10  ;;  %s2034_s13 = smov 64   ;;  %s2035_s9 = smov 112  }
  0x62   : > { %799 = vmatpush.msra.mxu0 %v774_v3  ;;  %s2036_s20 = smov 40   ;;  %s2037_s18 = smov 48  }
  0x63   : > { %v2351_v5 = vld [vmem:[#allocation2] sm:$0xff]  ;;  %s2614_s16 = sld [smem:[#allocation31_spill]]  ;;  %p1675_p0 = scmp.ne.s32.totalorder %s2009_s24, 1 }
  0x64   : > { %800 = vmatpush.msra.mxu0 %v773_v4 }
  0x65   : > { %1656 = vmatmul.msk.f32.vlgmr.msra.gmra.mxu0 %vm781_vm1, %v2351_v5 }
  0x69   : > { %s2615_s5 = scalar_lea.vmem %s2614_s16, %s2290_s12 }
  0xe2   : > { %v802_v7 = vpop.f32.mrf.mxu0 }
  0xe3   : > { %v2360_v8 = vadd.f32 %v1805_v6, %v802_v7 }
  0xe5   : > { %891 = vrot.lane.b32.xlu2 %v2360_v8, %s2027_s11  ;;  %811 = vrot.lane.b32.xlu0 %v2360_v8, %s2028_s8  ;;  %v809_v9 = vmul.f32 0.35355338, %v2360_v8  ;;  %s2617_s8 = scalar_lea.vmem %s2532_s4, %s2290_s12 }
  0xed   : > { %889 = vrot.lane.b32.xlu2 %v809_v9, %s2029_s25  ;;  %s2618_s25 = sld [smem:[#allocation32_spill]] }
  0xf5   : > { %1117 = vrot.lane.b32.xlu2 %v2360_v8, %s2030_s26  ;;  %s2619_s26 = scalar_lea.vmem %s2618_s25, %s2290_s12 }
  0xfd   : > { %1115 = vrot.lane.b32.xlu2 %v809_v9, %s2031_s23 }
 0x105   : > { %1015 = vrot.lane.b32.xlu2 %v2360_v8, %s2032_s15 }
 0x13f   : > { %v892_v11 = vpop.permute.xlu2 %891 }
 0x140   : > { %1660 = vmatpush.xpose.msk.msrb.mxu0 %vm813_vm2, %v892_v11 }
 0x147   : > { %v890_v12 = vpop.permute.xlu2 %889 }
 0x148   : > { %1661 = vmatmul.msk.f32.vlgmr.msrb.gmra.mxu0 %vm813_vm2, %v890_v12 }
 0x14f   : > { %v1118_v13 = vpop.permute.xlu2 %1117 }
 0x150   : > { %1669 = vmatpush.xpose.msk.msrb.mxu3 %vm813_vm2, %v1118_v13 }
 0x157   : > { %v812_v14 = vpop.permute.xlu0 %811  ;;  %v1116_v15 = vpop.permute.xlu2 %1115 }
 0x158   : > { %1657 = vmatpush.xpose.msk.msra.mxu1 %vm813_vm2, %v812_v14 }
 0x15b   : > { %1658 = vmatmul.msk.f32.vlgmr.msra.gmra.mxu1 %vm813_vm2, %v809_v9 }
 0x15f   : > { %v1016_v16 = vpop.permute.xlu2 %1015 }
 0x160   : > { %1665 = vmatpush.xpose.msk.msra.mxu0 %vm813_vm2, %v1016_v16  ;;  %v806_v16 = vld [vmem:[%s2303_s6 + $0x8] sm:$0xff] }
 0x161   : > { %985 = vmatpush.msrb.mxu1 %v806_v16 }
 0x1c5   : > { %v914_v17 = vpop.f32.mrf.mxu0 }
 0x1c6   : > { %v917_v18 = vsel %vm813_vm2, %v914_v17, -inf }
 0x1c7   : > { %918 = vmax.xlane.f32.xlu2 %v917_v18 }
 0x1d8   : > { %v836_v19 = vpop.f32.mrf.mxu1 }
 0x1d9   : > { %v839_v20 = vsel %vm813_vm2, %v836_v19, -inf }
 0x1da   : > { %840 = vmax.xlane.f32.xlu0 %v839_v20 }
 0x1df   : > { %941 = vrot.lane.b32.xlu2 %v2360_v8, %s2033_s29  ;;  %s2620_s29 = sld [smem:[#allocation33_spill]] }
 0x23a   : > { %v919_v33 = vpop.xlane.xlu2 %918 }
 0x23b   : > { %v920_v45 = vsub.f32 %v914_v17, %v919_v33 }
 0x23d   : > { %v921_v48 = vmul.f32 1.442695, %v920_v45 }
 0x242   : > { %v942_v40 = vpop.permute.xlu2 %941 }
 0x24d   : > { %v841_v21 = vpop.xlane.xlu0 %840 }
 0x24e   : > { %v842_v22 = vsub.f32 %v836_v19, %v841_v21 }
 0x250   : > { %v843_v23 = vmul.f32 1.442695, %v842_v22 }
 0x252   : > { %1815 = vpow2.f32 %v843_v23 }
 0x258   : > { %v1816_v24 = vpop.eup %1815 }
 0x259   : > { %v845_v25 = vsel %vm813_vm2, %v1816_v24, 0.0 }
 0x25a   : > { %846 = vadd.xlane.f32.xlu1 %v845_v25 }
 0x273   : > { %863 = vrot.lane.b32.xlu1 %v2360_v8, %s2034_s13  ;;  %s2621_s13 = scalar_lea.vmem %s2620_s29, %s2290_s12 }
 0x27b   : > { %1013 = vrot.lane.b32.xlu1 %v809_v9, %s2035_s9 }
 0x2cd   : > { %v847_v26 = vpop.xlane.xlu1 %846 }
 0x2ce   : > { %1817 = vrcp.f32 %v847_v26  ;;  %v859_v32 = vand.u32 2147483648, %v847_v26  ;;  %vm853_vm4 = vweird.f32 %v847_v26  ;;  %v857_v34 = vand.u32 2147483647, %v847_v26 }
 0x2cf   : > { %1819 = vpow2.f32 %v921_v48 }
 0x2d0   : > { %v860_v36 = vor.u32 1.1754944e-38, %v859_v32  ;;  %vm858_vm6 = vcmp.eq.f32.partialorder %v857_v34, 8.507059e+37 }
 0x2d4   : > { %v1818_v27 = vpop.eup %1817 }
 0x2d5   : > { %v849_v28 = vmul.f32 %v1818_v27, %v847_v26  ;;  %vm854_vm3 = vweird.f32 %v1818_v27  ;;  %v1820_v54 = vpop.eup %1819 }
 0x2d6   : > { %vm855_vm5 = vmor %vm853_vm4, %vm854_vm3  ;;  %v923_v55 = vsel %vm813_vm2, %v1820_v54, 0.0 }
 0x2d7   : > { %v850_v29 = vsub.f32 1.0, %v849_v28 }
 0x2d9   : > { %v851_v30 = vmul.f32 %v1818_v27, %v850_v29 }
 0x2db   : > { %v852_v31 = vadd.f32 %v1818_v27, %v851_v30 }
 0x2dd   : > { %v856_v35 = vsel %vm855_vm5, %v1818_v27, %v852_v31 }
 0x2de   : > { %v861_v37 = vsel %vm858_vm6, %v860_v36, %v856_v35 }
 0x2df   : > { %v862_v39 = vmul.f32 %v1816_v24, %v861_v37 }
 0x2e5   : > { %v864_v38 = vpop.permute.xlu1 %863 }
 0x2e6   : > { %884 = vmatpush.msra.mxu2 %v864_v38 }
 0x2e7   : > { %1659 = vmatmul.msk.f32.vlgmr.msra.gmra.mxu2 %vm813_vm2, %v862_v39  ;;  %v808_v39 = vld [vmem:[%s2303_s6 + $0x18] sm:$0xff] }
 0x2e8   : > { %962 = vmatpush.msrb.mxu2 %v942_v40  ;;  %v807_v40 = vld [vmem:[%s2303_s6 + $0x10] sm:$0xff] }
 0x2e9   : > { %1109 = vmatpush.msra.mxu1 %v807_v40 }
 0x2ed   : > { %v1014_v41 = vpop.permute.xlu1 %1013 }
 0x2ee   : > { %1666 = vmatmul.msk.f32.vlgmr.msra.gmra.mxu0 %vm813_vm2, %v1014_v41  ;;  %v1806_v41 = vld [vmem:[%s2615_s5] ss:$0 sm:$0xff] }
 0x36a   : > { %v886_v42 = vpop.f32.mrf.mxu2 }
 0x36b   : > { %1664 = vmatmul.msk.f32.vlgmr.msra.gmra.mxu3 %vm813_vm2, %v886_v42  ;;  %v1038_v43 = vpop.f32.mrf.mxu0  ;;  %v2038_v42 = vmov 0  }
 0x36c   : > { %v1041_v44 = vsel %vm813_vm2, %v1038_v43, -inf  ;;  %1804 = vset.pattern.permute.xlu0 %v2038_v42 }
 0x36d   : > { %1042 = vmax.xlane.f32.xlu1 %v1041_v44 }
 0x373   : > { %1670 = vmatmul.msk.f32.vlgmr.msrb.gmra.mxu3 %vm813_vm2, %v1116_v15 }
 0x386   : > { %1167 = vrot.lane.b32.xlu1 %v2360_v8, %s2036_s20 }
 0x3e0   : > { %v1043_v47 = vpop.xlane.xlu1 %1042 }
 0x3e1   : > { %v1044_v49 = vsub.f32 %v1038_v43, %v1043_v47  ;;  %v1807_v43 = vld [vmem:[%s758_s22] ss:$0 sm:$0xff] }
 0x3e3   : > { %v1045_v53 = vmul.f32 1.442695, %v1044_v49 }
 0x3e5   : > { %1821 = vpow2.f32 %v1045_v53 }
 0x3eb   : > { %v2389_v56 = vpop.eup %1821 }
 0x3ec   : > { %v1047_v57 = vsel %vm813_vm2, %v2389_v56, 0.0 }
 0x3ee   : > { %v2385_v46 = vpop.f32.mrf.mxu3 }
 0x3f6   : > { %v1140_v50 = vpop.f32.mrf.mxu3 }
 0x3f7   : > { %v1143_v51 = vsel %vm813_vm2, %v1140_v50, -inf }
 0x3f8   : > { %1144 = vmax.xlane.f32.xlu0 %v1143_v51  ;;  %v1168_v52 = vpop.permute.xlu1 %1167  ;;  %v1808_v51 = vld [vmem:[%s2617_s8] ss:$0 sm:$0xff] }
 0x3f9   : > { %1188 = vmatpush.msrb.mxu0 %v1168_v52 }
 0x400   : > { %924 = vadd.xlane.f32.xlu0 %v923_v55 }
 0x408   : > { %1048 = vadd.xlane.f32.xlu0 %v1047_v57 }
 0x46b   : > { %v1145_v58 = vpop.xlane.xlu0 %1144 }
 0x46c   : > { %v1146_v59 = vsub.f32 %v1140_v50, %v1145_v58 }
 0x46e   : > { %v1147_v60 = vmul.f32 1.442695, %v1146_v59  ;;  %v2039_v59 = vmov 32.0  }
 0x470   : > { %1823 = vpow2.f32 %v1147_v60 }
 0x473   : > { %v925_v61 = vpop.xlane.xlu0 %924 }
 0x474   : > { %1825 = vrcp.f32 %v925_v61  ;;  %v937_v3 = vand.u32 2147483648, %v925_v61  ;;  %v935_v6 = vand.u32 2147483647, %v925_v61  ;;  %vm931_vm8 = vweird.f32 %v925_v61 }
 0x476   : > { %v1824_v62 = vpop.eup %1823  ;;  %v938_v9 = vor.u32 1.1754944e-38, %v937_v3  ;;  %vm936_vm10 = vcmp.eq.f32.partialorder %v935_v6, 8.507059e+37  ;;  %v1273_v6 = vld [vmem:[%s2324_s3 + $0x18] sm:$0xff] }
 0x477   : > { %v1149_v63 = vsel %vm813_vm2, %v1824_v62, 0.0 }
 0x478   : > { %1150 = vadd.xlane.f32.xlu0 %v1149_v63 }
 0x47a   : > { %v1826_v0 = vpop.eup %1825 }
 0x47b   : > { %v927_v1 = vmul.f32 %v1826_v0, %v925_v61  ;;  %vm932_vm7 = vweird.f32 %v1826_v0  ;;  %v1049_v13 = vpop.xlane.xlu0 %1048 }
 0x47c   : > { %vm933_vm9 = vmor %vm931_vm8, %vm932_vm7  ;;  %1827 = vrcp.f32 %v1049_v13  ;;  %v1061_v23 = vand.u32 2147483648, %v1049_v13  ;;  %vm1055_vm12 = vweird.f32 %v1049_v13  ;;  %v1059_v25 = vand.u32 2147483647, %v1049_v13 }
 0x47d   : > { %v928_v2 = vsub.f32 1.0, %v927_v1  ;;  %vm1322_vm8 = vcmask 523264  }
 0x47e   : > { %v1062_v29 = vor.u32 1.1754944e-38, %v1061_v23  ;;  %vm1060_vm0 = vcmp.eq.f32.partialorder %v1059_v25, 8.507059e+37  ;;  %v1810_v23 = vld [vmem:[%s2621_s13] ss:$0 sm:$0xff] }
 0x47f   : > { %v929_v4 = vmul.f32 %v1826_v0, %v928_v2 }
 0x481   : > { %v930_v7 = vadd.f32 %v1826_v0, %v929_v4 }
 0x482   : > { %v1828_v14 = vpop.eup %1827 }
 0x483   : > { %v934_v10 = vsel %vm933_vm9, %v1826_v0, %v930_v7  ;;  %v1051_v15 = vmul.f32 %v1828_v14, %v1049_v13  ;;  %vm1056_vm11 = vweird.f32 %v1828_v14  ;;  %v1272_v7 = vld [vmem:[%s2324_s3 + $0x10] sm:$0xff] }
 0x484   : > { %v939_v11 = vsel %vm936_vm10, %v938_v9, %v934_v10  ;;  %vm1057_vm13 = vmor %vm1055_vm12, %vm1056_vm11  ;;  %v1271_v9 = vld [vmem:[%s2324_s3 + $0x8] sm:$0xff]  ;;  %v1270_v10 = vld [vmem:[%s2324_s3] sm:$0xff] }
 0x485   : > { %v940_v12 = vmul.f32 %v1820_v54, %v939_v11  ;;  %v1052_v18 = vsub.f32 1.0, %v1051_v15 }
 0x487   : > { %1662 = vmatmul.msk.f32.vlgmr.msrb.gmra.mxu2 %vm813_vm2, %v940_v12  ;;  %v1053_v19 = vmul.f32 %v1828_v14, %v1052_v18 }
 0x489   : > { %v1054_v22 = vadd.f32 %v1828_v14, %v1053_v19 }
 0x48b   : > { %v1058_v28 = vsel %vm1057_vm13, %v1828_v14, %v1054_v22 }
 0x48c   : > { %1065 = vrot.lane.b32.xlu0 %v2360_v8, %s2037_s18  ;;  %v1063_v32 = vsel %vm1060_vm0, %v1062_v29, %v1058_v28  ;;  %v1314_v28 = vld [vmem:[%s2338_s14 + $0x20] sm:$0xff]  ;;  %v1313_v29 = vld [vmem:[%s2338_s14 + $0x18] sm:$0xff] }
 0x48d   : > { %v1064_v37 = vmul.f32 %v2389_v56, %v1063_v32  ;;  %v1310_v32 = vld [vmem:[%s2338_s14] sm:$0xff] }
 0x494   : > { %1226 = vperm.xlu0 %1804, %v1806_v41  }
 0x49c   : > { %1350 = vperm.xlu0 %1804, %v1807_v43  }
 0x4eb   : > { %v1151_v17 = vpop.xlane.xlu0 %1150 }
 0x4ec   : > { %1829 = vrcp.f32 %v1151_v17  ;;  %v1163_v26 = vand.u32 2147483648, %v1151_v17  ;;  %v1161_v27 = vand.u32 2147483647, %v1151_v17  ;;  %vm1157_vm15 = vweird.f32 %v1151_v17 }
 0x4ed   : > { %1831 = vrcp.f32 %v2039_v59 }
 0x4ee   : > { %v1164_v31 = vor.u32 1.1754944e-38, %v1163_v26  ;;  %vm1162_vm4 = vcmp.eq.f32.partialorder %v1161_v27, 8.507059e+37  ;;  %v1317_v26 = vld [vmem:[%s2338_s14 + $0x38] sm:$0xff]  ;;  %v1315_v27 = vld [vmem:[%s2338_s14 + $0x28] sm:$0xff] }
 0x4ef   : > { %1334 = vmatpush.msra.mxu3 %v1317_v26 }
 0x4f2   : > { %v1830_v20 = vpop.eup %1829 }
 0x4f3   : > { %v1153_v21 = vmul.f32 %v1830_v20, %v1151_v17  ;;  %vm1158_vm14 = vweird.f32 %v1830_v20 }
 0x4f4   : > { %vm1159_vm3 = vmor %vm1157_vm15, %vm1158_vm14 }
 0x4f5   : > { %v1154_v24 = vsub.f32 1.0, %v1153_v21 }
 0x4f7   : > { %v1155_v8 = vmul.f32 %v1830_v20, %v1154_v24 }
 0x4f9   : > { %v1156_v30 = vadd.f32 %v1830_v20, %v1155_v8  ;;  %v1316_v8 = vld [vmem:[%s2338_s14 + $0x30] sm:$0xff] }
 0x4fa   : > { %1335 = vmatpush.msra.mxu3 %v1316_v8 }
 0x4fb   : > { %v1160_v33 = vsel %vm1159_vm3, %v1830_v20, %v1156_v30  ;;  %v1809_v20 = vld [vmem:[%s2619_s26] ss:$0 sm:$0xff]  ;;  %v1312_v30 = vld [vmem:[%s2338_s14 + $0x10] sm:$0xff] }
 0x4fc   : > { %v1165_v34 = vsel %vm1162_vm4, %v1164_v31, %v1160_v33  ;;  %1336 = vmatpush.msra.mxu3 %v1315_v27  ;;  %v1311_v31 = vld [vmem:[%s2338_s14 + $0x8] sm:$0xff]  ;;  %v1811_v33 = vld [vmem:[%s750_s27] ss:$0 sm:$0xff] }
 0x4fd   : > { %v1166_v35 = vmul.f32 %v1824_v62, %v1165_v34 }
 0x4fe   : > { %v1066_v36 = vpop.permute.xlu0 %1065  ;;  %1337 = vmatpush.msra.mxu3 %v1314_v28 }
 0x4ff   : > { %1086 = vmatpush.msra.mxu2 %v1066_v36  ;;  %1671 = vmatmul.msk.f32.vlgmr.msrb.gmra.mxu0 %vm813_vm2, %v1166_v35 }
 0x500   : > { %1667 = vmatmul.msk.f32.vlgmr.msra.gmra.mxu2 %vm813_vm2, %v1064_v37  ;;  %1338 = vmatpush.msra.mxu3 %v1313_v29 }
 0x501   : > { %1211 = vmatpush.msrb.mxu2 %v808_v39 }
 0x502   : > { %1339 = vmatpush.msra.mxu3 %v1312_v30 }
 0x504   : > { %1340 = vmatpush.msra.mxu3 %v1311_v31 }
 0x506   : > { %v1227_v55 = vpop.permute.xlu0 %1226  ;;  %1341 = vmatpush.msra.mxu3 %v1310_v32 }
 0x50a   : > { %v964_v38 = vpop.f32.mrf.mxu2 }
 0x50b   : > { %1663 = vmatmul.msk.f32.vlgmr.msrb.gmra.mxu1 %vm813_vm2, %v964_v38 }
 0x50c   : > { %1293 = vmatpush.msrb.mxu1 %v1273_v6 }
 0x50e   : > { %1294 = vmatpush.msrb.mxu1 %v1272_v7 }
 0x510   : > { %1295 = vmatpush.msrb.mxu1 %v1271_v9 }
 0x512   : > { %1296 = vmatpush.msrb.mxu1 %v1270_v10 }
 0x57c   : > { %v1190_v44 = vpop.f32.mrf.mxu0 }
 0x57d   : > { %1672 = vmatmul.msk.f32.vlgmr.msrb.gmra.mxu2 %vm813_vm2, %v1190_v44 }
 0x583   : > { %v1088_v45 = vpop.f32.mrf.mxu2 }
 0x584   : > { %1668 = vmatmul.msk.f32.vlgmr.msra.gmra.mxu1 %vm813_vm2, %v1088_v45  ;;  %v1812_v45 = vld [vmem:[%s2282_s7] ss:$0 sm:$0xff] }
 0x588   : > { %v987_v47 = vpop.f32.mrf.mxu1 }
 0x589   : > { %v1011_v48 = vadd.f32 %v2385_v46, %v987_v47  ;;  %v1832_v46 = vpop.eup %1831 }
 0x58a   : > { %v1237_v60 = vmul.f32 32.0, %v1832_v46  ;;  %vm1241_vm2 = vweird.f32 %v1832_v46 }
 0x58c   : > { %v1238_v61 = vsub.f32 1.0, %v1237_v60 }
 0x58e   : > { %v1239_v62 = vmul.f32 %v1832_v46, %v1238_v61 }
 0x590   : > { %v1240_v63 = vadd.f32 %v1832_v46, %v1239_v62 }
 0x592   : > { %v2423_v0 = vsel %vm1241_vm2, %v1832_v46, %v1240_v63 }
 0x600   : > { %v1213_v52 = vpop.f32.mrf.mxu2 }
 0x601   : > { %v1111_v49 = vpop.f32.mrf.mxu1 }
 0x602   : > { %v1114_v50 = vadd.f32 %v1111_v49, %v1011_v48  ;;  %v1351_v49 = vpop.permute.xlu0 %1350 }
 0x604   : > { %v1216_v53 = vadd.f32 %v1213_v52, %v1114_v50 }
 0x606   : > { %v1221_v54 = vadd.f32 %v1808_v51, %v1216_v53 }
 0x608   : > { %v1229_v56 = vmul.f32 %v1227_v55, %v1221_v54 }
 0x60a   : > { %v1230_v57 = vadd.f32 %v1229_v56, %v2351_v5 }
 0x60c   : > { %v1233_v58 = vsel %vm781_vm1, %v1230_v57, 0.0 }
 0x60d   : > { %1234 = vadd.xlane.f32.xlu2 %v1233_v58 }
 0x680   : > { %v1235_v1 = vpop.xlane.xlu2 %1234 }
 0x681   : > { %v1243_v5 = vmul.f32 %v2423_v0, %v1235_v1 }
 0x683   : > { %v1244_v2 = vsub.f32 %v1230_v57, %v1243_v5 }
 0x685   : > { %v1245_v3 = vmul.f32 %v1244_v2, %v1244_v2 }
 0x687   : > { %v1246_v4 = vsel %vm781_vm1, %v1245_v3, 0.0 }
 0x688   : > { %1247 = vadd.xlane.f32.xlu1 %v1246_v4 }
 0x6fb   : > { %v1248_v11 = vpop.xlane.xlu1 %1247 }
 0x6fc   : > { %v1249_v12 = vmul.f32 %v1248_v11, %v2423_v0 }
 0x6fe   : > { %v1250_v13 = vadd.f32 1e-05, %v1249_v12 }
 0x700   : > { %1833 = vrsqrt.f32 %v1250_v13  ;;  %vm1257_vm6 = vweird.f32 %v1250_v13 }
 0x706   : > { %v1834_v14 = vpop.eup %1833 }
 0x707   : > { %v1252_v15 = vmul.f32 %v1834_v14, %v1250_v13  ;;  %vm1258_vm5 = vweird.f32 %v1834_v14 }
 0x708   : > { %vm1259_vm7 = vmor %vm1257_vm6, %vm1258_vm5 }
 0x709   : > { %v1253_v16 = vmul.f32 %v1834_v14, %v1252_v15 }
 0x70b   : > { %v1254_v17 = vmul.f32 0.5, %v1253_v16 }
 0x70d   : > { %v1255_v18 = vsub.f32 1.5, %v1254_v17 }
 0x70f   : > { %v1256_v19 = vmul.f32 %v1834_v14, %v1255_v18 }
 0x711   : > { %v1260_v21 = vsel %vm1259_vm7, %v1834_v14, %v1256_v19 }
 0x712   : > { %v1261_v22 = vmul.f32 %v1260_v21, %v1244_v2  ;;  %v1813_v2 = vld [vmem:[%s761_s19] ss:$0 sm:$0xff] }
 0x714   : > { %v1265_v24 = vmul.f32 %v1809_v20, %v1261_v22 }
 0x716   : > { %v1269_v25 = vadd.f32 %v1810_v23, %v1265_v24 }
 0x718   : > { %1673 = vmatmul.msk.f32.vlgmr.msrb.gmra.mxu1 %vm781_vm1, %v1269_v25 }
 0x795   : > { %v1298_v34 = vpop.f32.mrf.mxu1 }
 0x796   : > { %v1299_v35 = vadd.f32 %v1811_v33, %v1298_v34 }
 0x798   : > { %v1302_v36 = vmul.f32 0.044715, %v1299_v35  ;;  %v1301_v42 = vmul.f32 0.5, %v1299_v35 }
 0x79a   : > { %v1303_v37 = vmul.f32 %v1302_v36, %v1299_v35 }
 0x79c   : > { %v1304_v38 = vmul.f32 %v1303_v37, %v1299_v35 }
 0x79e   : > { %v1305_v39 = vadd.f32 %v1304_v38, %v1299_v35 }
 0x7a0   : > { %v1306_v40 = vmul.f32 0.7978846, %v1305_v39 }
 0x7a2   : > { %1835 = vtanh.f32 %v1306_v40 }
 0x7a8   : > { %v1836_v41 = vpop.eup %1835 }
 0x7a9   : > { %v1308_v43 = vadd.f32 1.0, %v1836_v41 }
 0x7ab   : > { %v1309_v44 = vmul.f32 %v1308_v43, %v1301_v42 }
 0x7ad   : > { %1674 = vmatmul.msk.f32.vlgmr.msra.gmra.mxu3 %vm1322_vm8, %v1309_v44 }
 0x830   : > { %v1343_v47 = vpop.f32.mrf.mxu3 }
 0x831   : > { %v1344_v48 = vadd.f32 %v1812_v45, %v1343_v47 }
 0x833   : > { %v1353_v50 = vmul.f32 %v1351_v49, %v1344_v48 }
 0x835   : > { %v1354_v51 = vadd.f32 %v1353_v50, %v1269_v25 }
 0x837   : > { %v1357_v52 = vsel %vm781_vm1, %v1354_v51, 0.0 }
 0x838   : > { %1358 = vadd.xlane.f32.xlu0 %v1357_v52 }
 0x8ab   : > { %v1359_v53 = vpop.xlane.xlu0 %1358 }
 0x8ac   : > { %v1360_v54 = vmul.f32 %v1359_v53, %v2423_v0 }
 0x8ae   : > { %v1361_v55 = vsub.f32 %v1354_v51, %v1360_v54 }
 0x8b0   : > { %v1362_v56 = vmul.f32 %v1361_v55, %v1361_v55 }
 0x8b2   : > { %v1363_v57 = vsel %vm781_vm1, %v1362_v56, 0.0 }
 0x8b3   : > { %1364 = vadd.xlane.f32.xlu2 %v1363_v57 }
 0x926   : > { %v1365_v58 = vpop.xlane.xlu2 %1364 }
 0x927   : > { %v1366_v59 = vmul.f32 %v1365_v58, %v2423_v0  ;;  %v1814_v0 = vld [vmem:[%s764_s1] ss:$0 sm:$0xff] }
 0x929   : > { %v1367_v46 = vadd.f32 1e-05, %v1366_v59 }
 0x92b   : > { %1837 = vrsqrt.f32 %v1367_v46  ;;  %vm1374_vm10 = vweird.f32 %v1367_v46 }
 0x931   : > { %v1838_v60 = vpop.eup %1837 }
 0x932   : > { %v1369_v61 = vmul.f32 %v1838_v60, %v1367_v46  ;;  %vm1375_vm9 = vweird.f32 %v1838_v60 }
 0x933   : > { %vm1376_vm11 = vmor %vm1374_vm10, %vm1375_vm9 }
 0x934   : > { %v1370_v62 = vmul.f32 %v1838_v60, %v1369_v61 }
 0x936   : > { %v1371_v63 = vmul.f32 0.5, %v1370_v62 }
 0x938   : > { %v1372_v1 = vsub.f32 1.5, %v1371_v63 }
 0x93a   : > { %v1373_v5 = vmul.f32 %v1838_v60, %v1372_v1 }
 0x93c   : > { %v1377_v3 = vsel %vm1376_vm11, %v1838_v60, %v1373_v5 }
 0x93d   : > { %v1378_v4 = vmul.f32 %v1377_v3, %v1361_v55 }
 0x93f   : > { %v1382_v6 = vmul.f32 %v1813_v2, %v1378_v4  ;;  %1391 = sbr.rel (%p1675_p0) target bundleno = 2373 (0x945), region = 96 }
 0x941   : > { %v1386_v7 = vadd.f32 %v1814_v0, %v1382_v6 }
 0x943   : > { %1387 = vst.msk [vmem:[#allocation2] sm:$0xff] %vm781_vm1, %v1386_v7 }
 0x944   : > { %1392 = vst.msk [vmem:[%s2348_s28] sm:$0xff] %vm781_vm1, %v1386_v7 }
 0x945 PF: > { %s2625_s19 = sld [smem:[#allocation17_spill]]  ;;  %s1406_s11 = sshll.u32 %s2348_s28, 4  ;;  %s1407_s11 = int_to_ptr.vmem [resolvable:$true] %s1406_s11 }
 0x946   : > { %s2626_s5 = sld [smem:[#allocation27_spill]] }
 0x947   : > { %s2628_s1 = sld [smem:[#allocation41_spill]] }
 0x94b   : > { %s1677_s21 = sshll.u32 %s2625_s19, 3 }
 0x94c   : > { %s1394_s3 = scalar_lea.sflag [#allocation5], %s2626_s5 }
 0x94d   : > { %s1404_s6 = scalar_lea.hbm %s2628_s1, %s1677_s21  ;;  %s1919_s23 = scalar_lea.hbm %s2628_s1, 16 }
 0x94e   : > { %s1408_s8 = sshll.u32 %s1404_s6, 4  ;;  %s1409_s8 = int_to_ptr.hbm [resolvable:$true] %s1408_s8 }
 0x94f   : > { %s1913_s24 = sshra.s32 %s1409_s8, 4  ;;  %s1914_s24 = int_to_ptr.hbm [resolvable:$true] %s1913_s24 }
 0x950   : > { %s1915_s22 = scalar_lea.hbm %s1914_s24, 8  ;;  %p1920_p4 = scmp.lt.s32.totalorder %s1914_s24, %s2628_s1 }
 0x951   : > { %p1916_p2 = scmp.ne.s32.totalorder %s1914_s24, %s1915_s22  ;;  %p1921_p11 = scmp.lt.s32.totalorder %s1919_s23, %s1915_s22 }
 0x953   : > { %p1917_p5 = pnand %p1916_p2, %p2200_p8  ;;  %p1922_p12 = por %p1921_p11, %p1920_p4 }
 0x955   : > { %p1918_p7 = pneg %p1917_p5 }
 0x957   : > { %p1923_p13 = pnand %p1922_p12, %p1918_p7 }
 0x959   : > { %1926 = shalt.err (!%p1923_p13)
}
 0x95a   : > { %1688 = dma.vmem_to_hbm [thread:$0]  (%p2200_p8), %s1407_s11, 128, %s1409_s8, %s1394_s3  }
 0x95b PF: > { %s2629_s28 = sld [smem:[#allocation20_spill]] }
 0x95c   : > { %s2630_s13 = sld [smem:[#allocation14_spill]] }
 0x961   : > { %p1702_p1 = scmp.ge.s32.totalorder %s2629_s28, 2 }
 0x962   : > { %s1420_s20 = sand.u32 1, %s2630_s13  }
 0x963   : > { %p1698_p3 = pnand %p1702_p1, %p2204_p9  ;;  %s1421_s18 = scalar_lea.sflag [#allocation5], %s1420_s20 }
 0x965   : > { %p1699_p10 = pneg %p1698_p3 }
 0x967   : > { %1980 = dma.done.wait (%p1699_p10), %s1421_s18, 128  }
 0x968   : > { %1982 = vsyncadd (%p1699_p10), %s1421_s18, 4294967168  ;;  %s34_s28 = sadd.s32 1, %s2629_s28   ;;  %s2632_s18 = sld [smem:[#allocation12_spill]] }
 0x969   : > { %p31_p6 = scmp.ge.s32.totalorder %s34_s28, 6   ;;  %s2633_s19 = sld [smem:[#allocation13_spill]] }
 0x96a   : > { %s2634_s20 = sld [smem:[#allocation25_spill]] }
 0x96b   : > { %s2635_s21 = sld [smem:[#allocation15_spill]] }
 0x96c   : > { %s2636_s22 = sld [smem:[#allocation16_spill]] }
 0x96d   : > { %s2637_s23 = sld [smem:[#allocation26_spill]]  ;;  %33 = sbr.rel (!%p31_p6) target bundleno = 26 (0x1a), region = 185 }
 0x96e   : > { %s2638_s24 = sld [smem:[#allocation18_spill]] }
 0x96f   : > { %s2639_s25 = sld [smem:[#allocation19_spill]] }
 0x970   : > { %s2640_s26 = sld [smem:[#allocation23_spill]] }
 0x971   : > { %s2641_s27 = sld [smem:[#allocation24_spill]] }
 0x972   :  { %1427 = vsyncpa [#allocation4], 1 }
 0x973   :  { %1429 = vsyncpa [#allocation4 + $0x1], 1 }
 0x974   :  { %1430 = vsyncpa [#allocation7], 1 }
 0x975   :  { %1432 = vsyncpa [#allocation7 + $0x1], 1 }
 0x976   :  { %1433 = vsyncpa [#allocation5], 1 }
 0x977   :  { %1435 = vsyncpa [#allocation5 + $0x1], 1 }

</bundles_post_ra>
